<compile_context>
chip_gen: v5e
topology: v5e:2x2
jax: 0.10.0
libtpu: 0.0.40
codegen_flags: <defaults>
</compile_context>

<pallas_src>
import jax
import jax.numpy as jnp
from jax.experimental import pallas as pl
from jax.experimental.pallas import tpu as pltpu


# ----------------------------------------------------------------------------
# Kernels
# ----------------------------------------------------------------------------

def _local_branch(a, w1_ref, b1_ref, w2_ref, b2_ref):
    """conv1x1 -> BN(folded) -> ReLU -> conv1x1 -> BN(folded), weight-stationary.

    a: (C, T) activation tile. Weights: (Ci, C), (Ci, 1), (C, Ci), (C, 1).
    """
    h = jnp.dot(w1_ref[...], a, preferred_element_type=jnp.float32) + b1_ref[...]
    h = jnp.maximum(h, 0.0)
    return jnp.dot(w2_ref[...], h, preferred_element_type=jnp.float32) + b2_ref[...]


def _stage1_sum_kernel(x_ref, r_ref, xg1_ref,
                       lw1_ref, lb1_ref, lw2_ref, lb2_ref,
                       s_ref):
    """Computes per-batch sum over HW of xi = res + wei*(x-res) (stage-1 gate)."""
    t = pl.program_id(1)

    x = x_ref[0]                      # (C, T)
    r = r_ref[0]                      # (C, T)
    xa = x + r
    xl = _local_branch(xa, lw1_ref, lb1_ref, lw2_ref, lb2_ref)
    wei = jax.nn.sigmoid(xl + xg1_ref[0])         # (C,T) + (C,1) broadcast
    xi = r + wei * (x - r)

    @pl.when(t == 0)
    def _():
        s_ref[...] = jnp.zeros_like(s_ref)

    part = jnp.sum(xi, axis=-1, keepdims=True)    # (C, 1)
    s_ref[...] += part[None, :, :]


def _dcaf_fuse_kernel(x_ref, r_ref, xg1_ref, xg2_ref,
                      lw1_ref, lb1_ref, lw2_ref, lb2_ref,
                      mw1_ref, mb1_ref, mw2_ref, mb2_ref,
                      o_ref):
    """Full per-position DCAF fuse (stage-1 gate recomputed, stage-2 applied)."""
    x = x_ref[0]                      # (C, T)
    r = r_ref[0]                      # (C, T)
    d = x - r
    xa = x + r

    # stage 1: wei = sigmoid(local_att(xa) + global_att(xa)); xi = res + wei*(x-res)
    xl = _local_branch(xa, lw1_ref, lb1_ref, lw2_ref, lb2_ref)
    wei = jax.nn.sigmoid(xl + xg1_ref[0])
    xi = r + wei * d

    # stage 2: wei2 = sigmoid(local_att2(xi) + global_att(xi)); xo = res + wei2*(x-res)
    xl2 = _local_branch(xi, mw1_ref, mb1_ref, mw2_ref, mb2_ref)
    wei2 = jax.nn.sigmoid(xl2 + xg2_ref[0])
    o_ref[0] = r + wei2 * d


# ----------------------------------------------------------------------------
# Wrapper
# ----------------------------------------------------------------------------

def _pick_tile(hw, cap=2048):
    """Largest lane-dense (multiple of 128) tile that divides HW, capped; else whole HW."""
    if hw % 128 == 0:
        for t in range(cap, 127, -128):
            if hw % t == 0:
                return t
    return hw


def dcaf_forward(x_nchw, res_nchw, params, *, tile_cap=2048):
    """x_nchw, res_nchw: (N, C, H, W) float32. Returns (N, C, H, W)."""
    (lw1, lb1, lw2, lb2,          # local_att   (BN folded)
     gw1, gb1, gw2, gb2,          # global_att  (BN folded)
     mw1, mb1, mw2, mb2) = params  # local_att2  (BN folded)

    N, C, H, W = x_nchw.shape
    HW = H * W
    Ci = lw1.shape[0]

    # free, contiguous reshapes (no transposes)
    x3 = x_nchw.reshape(N, C, HW)
    r3 = res_nchw.reshape(N, C, HW)

    T = _pick_tile(HW, tile_cap)
    n_tiles = HW // T

    def glob_branch(m):
        # m: (N, C) -> (N, C) ; tiny, done in plain JAX
        h = jnp.maximum(m @ gw1.T + gb1[:, 0], 0.0)
        return h @ gw2.T + gb2[:, 0]

    # -------- stage-1 global gate (hoisted): xg1 = global_att(mean(x + res)) --------
    mean_xa = jnp.mean(x3 + r3, axis=2)               # (N, C)
    xg1 = glob_branch(mean_xa)[..., None]             # (N, C, 1)

    full2d = lambda shape: pl.BlockSpec(shape, lambda n, t: (0, 0))
    act_spec = pl.BlockSpec((1, C, T), lambda n, t: (n, 0, t))
    vec_spec = pl.BlockSpec((1, C, 1), lambda n, t: (n, 0, 0))

    # -------- kernel 1: per-batch sum of xi (accumulated over HW tiles) --------
    xi_sum = pl.pallas_call(
        _stage1_sum_kernel,
        out_shape=jax.ShapeDtypeStruct((N, C, 1), jnp.float32),
        grid_spec=pltpu.PrefetchScalarGridSpec(
            num_scalar_prefetch=0,
            grid=(N, n_tiles),
            in_specs=[
                act_spec,                 # x
                act_spec,                 # res
                vec_spec,                 # xg1
                full2d((Ci, C)), full2d((Ci, 1)),    # local conv1 (folded BN)
                full2d((C, Ci)), full2d((C, 1)),     # local conv2 (folded BN)
            ],
            out_specs=pl.BlockSpec((1, C, 1), lambda n, t: (n, 0, 0)),
        ),
        compiler_params=pltpu.CompilerParams(
            dimension_semantics=("parallel", "arbitrary"),
            vmem_limit_bytes=32 * 1024 * 1024,
        ),
    )(x3, r3, xg1, lw1, lb1, lw2, lb2)

    # -------- stage-2 global gate: xg2 = global_att(mean(xi))  (spec reuses global_att) ----
    mean_xi = xi_sum[:, :, 0] / float(HW)             # (N, C)
    xg2 = glob_branch(mean_xi)[..., None]             # (N, C, 1)

    # -------- kernel 2: fully-parallel per-tile fuse -> xo --------
    xo = pl.pallas_call(
        _dcaf_fuse_kernel,
        out_shape=jax.ShapeDtypeStruct((N, C, HW), jnp.float32),
        grid_spec=pltpu.PrefetchScalarGridSpec(
            num_scalar_prefetch=0,
            grid=(N, n_tiles),
            in_specs=[
                act_spec,                 # x
                act_spec,                 # res
                vec_spec,                 # xg1
                vec_spec,                 # xg2
                full2d((Ci, C)), full2d((Ci, 1)),    # local_att  conv1
                full2d((C, Ci)), full2d((C, 1)),     # local_att  conv2
                full2d((Ci, C)), full2d((Ci, 1)),    # local_att2 conv1
                full2d((C, Ci)), full2d((C, 1)),     # local_att2 conv2
            ],
            out_specs=act_spec,
        ),
        compiler_params=pltpu.CompilerParams(
            dimension_semantics=("parallel", "parallel"),
            vmem_limit_bytes=32 * 1024 * 1024,
        ),
    )(x3, r3, xg1, xg2, lw1, lb1, lw2, lb2, mw1, mb1, mw2, mb2)

    return xo.reshape(N, C, H, W)


# ----------------------------------------------------------------------------
# Parameter construction (BN folded into 1x1 convs, inference mode)
# ----------------------------------------------------------------------------

def _fold_conv_bn(w, b, gamma, beta, mean, var, eps=1e-5):
    """Fold inference-mode BatchNorm into a 1x1 conv.

    w: (Cout, Cin), b: (Cout,). Returns ((Cout, Cin), (Cout, 1)) fp32.
    """
    # TODO(synk): training-mode BatchNorm (batch statistics + running-stat update)
    # has no in-kernel equivalent here; inference-mode folding is implemented.
    scale = gamma / jnp.sqrt(var + eps)
    w_f = (w * scale[:, None]).astype(jnp.float32)
    b_f = ((b - mean) * scale + beta).astype(jnp.float32)
    return w_f, b_f.reshape(-1, 1)


def make_params(key, channels=64, r=4):
    ci = channels // r
    keys = jax.random.split(key, 36)
    it = iter(keys)

    def conv_bn(cin, cout):
        w = jax.random.normal(next(it), (cout, cin), jnp.float32) * 0.1
        b = jax.random.normal(next(it), (cout,), jnp.float32) * 0.1
        gamma = 1.0 + 0.1 * jax.random.normal(next(it), (cout,), jnp.float32)
        beta = 0.1 * jax.random.normal(next(it), (cout,), jnp.float32)
        mean = 0.05 * jax.random.normal(next(it), (cout,), jnp.float32)
        var = jnp.abs(1.0 + 0.1 * jax.random.normal(next(it), (cout,), jnp.float32))
        return _fold_conv_bn(w, b, gamma, beta, mean, var)

    lw1, lb1 = conv_bn(channels, ci)   # local_att   conv1+BN
    lw2, lb2 = conv_bn(ci, channels)   # local_att   conv2+BN
    gw1, gb1 = conv_bn(channels, ci)   # global_att  conv1+BN
    gw2, gb2 = conv_bn(ci, channels)   # global_att  conv2+BN
    mw1, mb1 = conv_bn(channels, ci)   # local_att2  conv1+BN
    mw2, mb2 = conv_bn(ci, channels)   # local_att2  conv2+BN
    # NOTE: the reference forward never uses global_att2 (it applies global_att to xi),
    # so those parameters are not materialized.
    return (lw1, lb1, lw2, lb2, gw1, gb1, gw2, gb2, mw1, mb1, mw2, mb2)


# ----------------------------------------------------------------------------
# Pure-JAX reference of the same (BN-folded, inference) DCAF forward
# ----------------------------------------------------------------------------

def dcaf_reference(x, res, params):
    (lw1, lb1, lw2, lb2, gw1, gb1, gw2, gb2, mw1, mb1, mw2, mb2) = params
    N, C, H, W = x.shape
    x3 = x.reshape(N, C, H * W)
    r3 = res.reshape(N, C, H * W)

    def local(a, w1, b1, w2, b2):
        h = jnp.maximum(jnp.einsum('oc,ncs->nos', w1, a) + b1[None], 0.0)
        return jnp.einsum('oc,ncs->nos', w2, h) + b2[None]

    def glob(a, w1, b1, w2, b2):
        m = a.mean(axis=2, keepdims=True)
        h = jnp.maximum(jnp.einsum('oc,ncs->nos', w1, m) + b1[None], 0.0)
        return jnp.einsum('oc,ncs->nos', w2, h) + b2[None]

    xa = x3 + r3
    wei = jax.nn.sigmoid(local(xa, lw1, lb1, lw2, lb2) + glob(xa, gw1, gb1, gw2, gb2))
    xi = x3 * wei + r3 * (1.0 - wei)
    wei2 = jax.nn.sigmoid(local(xi, mw1, mb1, mw2, mb2) + glob(xi, gw1, gb1, gw2, gb2))
    xo = x3 * wei2 + r3 * (1.0 - wei2)
    return xo.reshape(N, C, H, W)


if __name__ == "__main__":
    channels, r = 64, 4
    N, H, W = 2, 8, 8

    key = jax.random.PRNGKey(0)
    kx, kr, kp = jax.random.split(key, 3)
    x = jax.random.normal(kx, (N, channels, H, W), jnp.float32)
    residual = jax.random.normal(kr, (N, channels, H, W), jnp.float32)
    params = make_params(kp, channels, r)

    out = dcaf_forward(x, residual, params)
    out = jax.block_until_ready(out)

    ref = dcaf_reference(x, residual, params)
    assert out.shape == (N, channels, H, W)
    assert jnp.allclose(out, ref, atol=1e-4, rtol=1e-4), "mismatch vs reference"

    print("KERNEL_OK")
</pallas_src>

<mosaic_0001>
module attributes {stable_mosaic.version = 11 : i64} {
  func.func @_stage1_sum_kernel(%arg0: i32, %arg1: i32, %arg2: memref<1x64x64xf32, #tpu.memory_space<vmem>>, %arg3: memref<1x64x64xf32, #tpu.memory_space<vmem>>, %arg4: memref<1x64x1xf32, #tpu.memory_space<vmem>>, %arg5: memref<16x64xf32, #tpu.memory_space<vmem>>, %arg6: memref<16x1xf32, #tpu.memory_space<vmem>>, %arg7: memref<64x16xf32, #tpu.memory_space<vmem>>, %arg8: memref<64x1xf32, #tpu.memory_space<vmem>>, %arg9: memref<1x64x1xf32, #tpu.memory_space<vmem>>) attributes {dimension_semantics = [#tpu.dimension_semantics<parallel>, #tpu.dimension_semantics<arbitrary>], iteration_bounds = array<i64: 2, 1>, scalar_prefetch = 0 : i64, scratch_operands = 0 : i64, tpu.core_type = #tpu.core_type<tc>, window_params = [{transform_indices = @transform_0, window_bounds = array<i64: 1, 64, 64>}, {transform_indices = @transform_1, window_bounds = array<i64: 1, 64, 64>}, {transform_indices = @transform_2, window_bounds = array<i64: 1, 64, 1>}, {pipeline_mode = #tpu.pipeline_mode<synchronous>, transform_indices = @transform_3, window_bounds = array<i64: 16, 64>}, {pipeline_mode = #tpu.pipeline_mode<synchronous>, transform_indices = @transform_4, window_bounds = array<i64: 16, 1>}, {pipeline_mode = #tpu.pipeline_mode<synchronous>, transform_indices = @transform_5, window_bounds = array<i64: 64, 16>}, {pipeline_mode = #tpu.pipeline_mode<synchronous>, transform_indices = @transform_6, window_bounds = array<i64: 64, 1>}, {transform_indices = @transform_7, window_bounds = array<i64: 1, 64, 1>}]} {
    %c0 = arith.constant 0 : index
    %c0_0 = arith.constant 0 : index
    %c0_1 = arith.constant 0 : index
    %0 = vector.load %arg2[%c0, %c0_0, %c0_1] : memref<1x64x64xf32, #tpu.memory_space<vmem>>, vector<1x64x64xf32>
    %1 = vector.shape_cast %0 : vector<1x64x64xf32> to vector<64x64xf32>
    %c0_2 = arith.constant 0 : index
    %c0_3 = arith.constant 0 : index
    %c0_4 = arith.constant 0 : index
    %2 = vector.load %arg3[%c0_2, %c0_3, %c0_4] : memref<1x64x64xf32, #tpu.memory_space<vmem>>, vector<1x64x64xf32>
    %3 = vector.shape_cast %2 : vector<1x64x64xf32> to vector<64x64xf32>
    %4 = arith.addf %1, %3 : vector<64x64xf32>
    %c0_5 = arith.constant 0 : index
    %c0_6 = arith.constant 0 : index
    %5 = vector.load %arg5[%c0_5, %c0_6] : memref<16x64xf32, #tpu.memory_space<vmem>>, vector<16x64xf32>
    %cst = arith.constant dense<0.000000e+00> : vector<16x64xf32>
    %6 = tpu.matmul %5, %4, %cst {dimension_numbers = #tpu.dot_dimension_numbers<[1], [0], [0], [1], [0, 0, 1, 1], [], []>} : vector<16x64xf32>, vector<64x64xf32>, vector<16x64xf32> -> vector<16x64xf32>
    %c0_7 = arith.constant 0 : index
    %c0_8 = arith.constant 0 : index
    %7 = vector.load %arg6[%c0_7, %c0_8] : memref<16x1xf32, #tpu.memory_space<vmem>>, vector<16x1xf32>
    %8 = vector.broadcast %7 : vector<16x1xf32> to vector<16x64xf32>
    %9 = arith.addf %6, %8 : vector<16x64xf32>
    %cst_9 = arith.constant 0.000000e+00 : f32
    %10 = vector.broadcast %cst_9 : f32 to vector<16x64xf32>
    %11 = arith.maximumf %9, %10 : vector<16x64xf32>
    %c0_10 = arith.constant 0 : index
    %c0_11 = arith.constant 0 : index
    %12 = vector.load %arg7[%c0_10, %c0_11] : memref<64x16xf32, #tpu.memory_space<vmem>>, vector<64x16xf32>
    %cst_12 = arith.constant dense<0.000000e+00> : vector<64x64xf32>
    %13 = tpu.matmul %12, %11, %cst_12 {dimension_numbers = #tpu.dot_dimension_numbers<[1], [0], [0], [1], [0, 0, 1, 1], [], []>} : vector<64x16xf32>, vector<16x64xf32>, vector<64x64xf32> -> vector<64x64xf32>
    %c0_13 = arith.constant 0 : index
    %c0_14 = arith.constant 0 : index
    %14 = vector.load %arg8[%c0_13, %c0_14] : memref<64x1xf32, #tpu.memory_space<vmem>>, vector<64x1xf32>
    %15 = vector.broadcast %14 : vector<64x1xf32> to vector<64x64xf32>
    %16 = arith.addf %13, %15 : vector<64x64xf32>
    %c0_15 = arith.constant 0 : index
    %c0_16 = arith.constant 0 : index
    %c0_17 = arith.constant 0 : index
    %17 = vector.load %arg4[%c0_15, %c0_16, %c0_17] : memref<1x64x1xf32, #tpu.memory_space<vmem>>, vector<1x64x1xf32>
    %18 = vector.shape_cast %17 : vector<1x64x1xf32> to vector<64x1xf32>
    %19 = vector.broadcast %18 : vector<64x1xf32> to vector<64x64xf32>
    %20 = arith.addf %16, %19 : vector<64x64xf32>
    %21 = arith.negf %20 : vector<64x64xf32>
    %22 = math.exp %21 : vector<64x64xf32>
    %cst_18 = arith.constant 1.000000e+00 : f32
    %23 = vector.broadcast %cst_18 : f32 to vector<64x64xf32>
    %24 = arith.addf %23, %22 : vector<64x64xf32>
    %25 = arith.divf %23, %24 : vector<64x64xf32>
    %26 = arith.subf %1, %3 : vector<64x64xf32>
    %27 = arith.mulf %25, %26 : vector<64x64xf32>
    %28 = arith.addf %3, %27 : vector<64x64xf32>
    %c0_i32 = arith.constant 0 : i32
    %29 = arith.cmpi eq, %arg1, %c0_i32 : i32
    %30 = arith.extui %29 : i1 to i32
    %c0_i32_19 = arith.constant 0 : i32
    %31 = arith.cmpi ne, %30, %c0_i32_19 : i32
    scf.if %31 {
      %cst_27 = arith.constant 0.000000e+00 : f32
      %38 = vector.broadcast %cst_27 : f32 to vector<1x64x1xf32>
      %c0_28 = arith.constant 0 : index
      %c0_29 = arith.constant 0 : index
      %c0_30 = arith.constant 0 : index
      %39 = vector.load %arg9[%c0_28, %c0_29, %c0_30] : memref<1x64x1xf32, #tpu.memory_space<vmem>>, vector<1x64x1xf32>
      tpu.vector_store %arg9[%c0_28, %c0_29, %c0_30], %38 {strides = array<i32>} : memref<1x64x1xf32, #tpu.memory_space<vmem>>, vector<1x64x1xf32>,
    } else {
    }
    %cst_20 = arith.constant dense<0.000000e+00> : vector<64xf32>
    %32 = vector.multi_reduction <add>, %28, %cst_20 [1] : vector<64x64xf32> to vector<64xf32>
    %33 = vector.shape_cast %32 : vector<64xf32> to vector<64x1xf32>
    %c0_21 = arith.constant 0 : index
    %c0_22 = arith.constant 0 : index
    %c0_23 = arith.constant 0 : index
    %34 = vector.load %arg9[%c0_21, %c0_22, %c0_23] : memref<1x64x1xf32, #tpu.memory_space<vmem>>, vector<1x64x1xf32>
    %35 = vector.shape_cast %33 : vector<64x1xf32> to vector<1x64x1xf32>
    %36 = arith.addf %34, %35 : vector<1x64x1xf32>
    %c0_24 = arith.constant 0 : index
    %c0_25 = arith.constant 0 : index
    %c0_26 = arith.constant 0 : index
    %37 = vector.load %arg9[%c0_24, %c0_25, %c0_26] : memref<1x64x1xf32, #tpu.memory_space<vmem>>, vector<1x64x1xf32>
    tpu.vector_store %arg9[%c0_24, %c0_25, %c0_26], %36 {strides = array<i32>} : memref<1x64x1xf32, #tpu.memory_space<vmem>>, vector<1x64x1xf32>,
    return
  }
  func.func @transform_0(%arg0: i32, %arg1: i32) -> (i32, i32, i32) {
    %c0_i32 = arith.constant 0 : i32
    %c0_i32_0 = arith.constant 0 : i32
    return %arg0, %c0_i32, %arg1 : i32, i32, i32
  }
  func.func @transform_1(%arg0: i32, %arg1: i32) -> (i32, i32, i32) {
    %c0_i32 = arith.constant 0 : i32
    %c0_i32_0 = arith.constant 0 : i32
    return %arg0, %c0_i32, %arg1 : i32, i32, i32
  }
  func.func @transform_2(%arg0: i32, %arg1: i32) -> (i32, i32, i32) {
    %c0_i32 = arith.constant 0 : i32
    %c0_i32_0 = arith.constant 0 : i32
    %c0_i32_1 = arith.constant 0 : i32
    return %arg0, %c0_i32, %c0_i32_0 : i32, i32, i32
  }
  func.func @transform_3(%arg0: i32, %arg1: i32) -> (i32, i32) {
    %c0_i32 = arith.constant 0 : i32
    %c0_i32_0 = arith.constant 0 : i32
    %c0_i32_1 = arith.constant 0 : i32
    return %c0_i32, %c0_i32_0 : i32, i32
  }
  func.func @transform_4(%arg0: i32, %arg1: i32) -> (i32, i32) {
    %c0_i32 = arith.constant 0 : i32
    %c0_i32_0 = arith.constant 0 : i32
    %c0_i32_1 = arith.constant 0 : i32
    return %c0_i32, %c0_i32_0 : i32, i32
  }
  func.func @transform_5(%arg0: i32, %arg1: i32) -> (i32, i32) {
    %c0_i32 = arith.constant 0 : i32
    %c0_i32_0 = arith.constant 0 : i32
    %c0_i32_1 = arith.constant 0 : i32
    return %c0_i32, %c0_i32_0 : i32, i32
  }
  func.func @transform_6(%arg0: i32, %arg1: i32) -> (i32, i32) {
    %c0_i32 = arith.constant 0 : i32
    %c0_i32_0 = arith.constant 0 : i32
    %c0_i32_1 = arith.constant 0 : i32
    return %c0_i32, %c0_i32_0 : i32, i32
  }
  func.func @transform_7(%arg0: i32, %arg1: i32) -> (i32, i32, i32) {
    %c0_i32 = arith.constant 0 : i32
    %c0_i32_0 = arith.constant 0 : i32
    %c0_i32_1 = arith.constant 0 : i32
    return %arg0, %c0_i32, %c0_i32_0 : i32, i32, i32
  }
}

</mosaic_0001>

<bundles_post_ra>
// kernel: tpu_custom_call.1
= control target key start
LH: loop header
LB: loop body
LE: loop exit
PB: predicated region body
PF: predicated region fallthrough
CT: control target
= control target key end

     0   :  { %s1106_s24 = smov 0   ;;  %s1108_s25 = smov 0   ;;  %s1499_s0 = inlined_call_operand.vmem [shape: f32[2,64,64], index: 0, kind: input, shape index: {}]   ;;  %s1500_s1 = inlined_call_operand.vmem [shape: f32[2,64,64], index: 1, kind: input, shape index: {}]   ;;  %s1501_s2 = inlined_call_operand.vmem [shape: f32[2,64,1], index: 2, kind: input, shape index: {}]   ;;  %s1502_s3 = inlined_call_operand.vmem [shape: f32[16,64], index: 3, kind: input, shape index: {}]   ;;  %s1503_s4 = inlined_call_operand.vmem [shape: f32[16,1], index: 4, kind: input, shape index: {}]   ;;  %s1504_s5 = inlined_call_operand.vmem [shape: f32[64,16], index: 5, kind: input, shape index: {}]   ;;  %s1505_s6 = inlined_call_operand.vmem [shape: f32[64,1], index: 6, kind: input, shape index: {}]   ;;  %s1506_s7 = inlined_call_operand.vmem [shape: f32[2,64,1], index: 7, kind: output, shape index: {}]  }
   0x1   :  { %s1110_s26 = smov 0  }
   0x2 LB: > { %s29_s27 = sadd.s32 1, %s1058_s25  ;;  %p942_p0 = scmp.ge.s32.totalorder %s1062_s26, 1  ;;  %s1062_s26 = sphi %s1110_s26, %s17_s26   ;;  %s1058_s25 = sphi %s1108_s25, %s1520_s25   ;;  %s1054_s24 = sphi %s1106_s24, %s1519_s24  }
   0x3   : > { %p31_p1 = scmp.ge.s32.totalorder %s29_s27, 2  ;;  %p279_p2 = scmp.lt.s32.totalorder %s1062_s26, 3 }
   0x5   : > { %s1522_s27 = smov (%p31_p1, %s29_s27), 0  ;;  %p280_p3 = pnand %p942_p0, %p279_p2 }
   0x6   : > { %p327_p4 = scmp.lt.s32.totalorder (!%p280_p3), %s1054_s24, 1 }
   0x7   : > { %283 = sbr.rel (%p280_p3) target bundleno = 485 (0x1e5), region = 48 }
   0xc   : > { %v380_v0 = vld [vmem:[%s1503_s4 + $0x8] sm:$0xff]  ;;  %v1064_v1 = vmov 0   ;;  %s1524_s24 = smov (!%p327_p4, %s1054_s24), 1  ;;  %v379_v2 = vld [vmem:[%s1503_s4] sm:$0xff]  ;;  %vm391_vm0 = vcmask 523264   ;;  %v438_v30 = vld [vmem:[%s1505_s6 + $0x38] sm:$0xff] }
   0xd   : > { %1005 = vset.pattern.permute.xlu0 %v1064_v1  ;;  %1006 = vset.pattern.permute.xlu1 %v1064_v1  ;;  %s1127_s30 = sshll.u32 %s1524_s24, 6  ;;  %v431_v19 = vld [vmem:[%s1505_s6] sm:$0xff]  ;;  %v378_v31 = vld [vmem:[%s1502_s3 + $0x8] sm:$0xff]  ;;  %v433_v37 = vld [vmem:[%s1505_s6 + $0x10] sm:$0xff]  ;;  %vm479_vm1 = vcmask 130048  }
   0xe   : > { %388 = vperm.xlu0 %1005, %v380_v0   ;;  %1007 = vset.pattern.permute.xlu2 %v1064_v1  ;;  %s1133_s10 = scalar_lea.vmem %s1499_s0, %s1127_s30  ;;  %s1139_s13 = scalar_lea.vmem %s1500_s1, %s1127_s30  ;;  %v435_v23 = vld [vmem:[%s1505_s6 + $0x20] sm:$0xff]  ;;  %v432_v34 = vld [vmem:[%s1505_s6 + $0x8] sm:$0xff]  ;;  %v434_v39 = vld [vmem:[%s1505_s6 + $0x18] sm:$0xff] }
   0xf   : > { %v1145_v3 = vld [vmem:[%s1133_s10 + $0x38] sm:$0xff]  ;;  %v1151_v5 = vld [vmem:[%s1133_s10 + $0x30] sm:$0xff]  ;;  %v1159_v8 = vld [vmem:[%s1133_s10 + $0x28] sm:$0xff]  ;;  %441 = vperm.xlu1 %1006, %v431_v19   ;;  %s347_s29 = scalar_lea.vmem %s1501_s2, %s1127_s30  ;;  %451 = vperm.xlu2 %1007, %v433_v37   ;;  %s1402_s19 = scalar_lea.vmem %s1506_s7, %s1127_s30 }
  0x10   : > { %v1148_v4 = vld [vmem:[%s1139_s13 + $0x38] sm:$0xff]  ;;  %v1156_v7 = vld [vmem:[%s1139_s13 + $0x30] sm:$0xff]  ;;  %v1162_v9 = vld [vmem:[%s1139_s13 + $0x28] sm:$0xff] }
  0x11   : > { %v376_v6 = vadd.f32 %v1148_v4, %v1145_v3  ;;  %v375_v10 = vadd.f32 %v1156_v7, %v1151_v5  ;;  %v1167_v11 = vld [vmem:[%s1133_s10 + $0x20] sm:$0xff]  ;;  %v374_v13 = vadd.f32 %v1162_v9, %v1159_v8  ;;  %v1175_v14 = vld [vmem:[%s1133_s10 + $0x18] sm:$0xff]  ;;  %v1183_v17 = vld [vmem:[%s1133_s10 + $0x10] sm:$0xff] }
  0x12   : > { %v1170_v12 = vld [vmem:[%s1139_s13 + $0x20] sm:$0xff]  ;;  %v1178_v15 = vld [vmem:[%s1139_s13 + $0x18] sm:$0xff]  ;;  %v1186_v18 = vld [vmem:[%s1139_s13 + $0x10] sm:$0xff] }
  0x13   : > { %406 = vmatpush.msra.mxu0 %v376_v6  ;;  %v373_v16 = vadd.f32 %v1170_v12, %v1167_v11  ;;  %v372_v20 = vadd.f32 %v1178_v15, %v1175_v14  ;;  %v1194_v21 = vld [vmem:[%s1133_s10 + $0x8] sm:$0xff]  ;;  %v371_v24 = vadd.f32 %v1186_v18, %v1183_v17  ;;  %v1205_v25 = vld [vmem:[%s1133_s10] sm:$0xff]  ;;  %v547_v32 = vld [vmem:[%s347_s29 + $0x10] sm:$0xff] }
  0x14   : > { %v1197_v22 = vld [vmem:[%s1139_s13 + $0x8] sm:$0xff]  ;;  %v1208_v26 = vld [vmem:[%s1139_s13] sm:$0xff]  ;;  %v548_v38 = vld [vmem:[%s347_s29 + $0x18] sm:$0xff] }
  0x15   : > { %407 = vmatpush.msra.mxu0 %v375_v10  ;;  %v370_v27 = vadd.f32 %v1197_v22, %v1194_v21  ;;  %v369_v28 = vadd.f32 %v1208_v26, %v1205_v25  ;;  %v377_v29 = vld [vmem:[%s1502_s3] sm:$0xff]  ;;  %v550_v33 = vld [vmem:[%s347_s29 + $0x28] sm:$0xff]  ;;  %v551_v40 = vld [vmem:[%s347_s29 + $0x30] sm:$0xff] }
  0x16   : > { %383 = vperm.xlu0 %1005, %v379_v2   ;;  %v436_v35 = vld [vmem:[%s1505_s6 + $0x28] sm:$0xff]  ;;  %v545_v36 = vld [vmem:[%s347_s29] sm:$0xff]  ;;  %v437_v41 = vld [vmem:[%s1505_s6 + $0x30] sm:$0xff] }
  0x17   : > { %408 = vmatpush.msra.mxu0 %v374_v13  ;;  %446 = vperm.xlu1 %1006, %v432_v34   ;;  %v546_v42 = vld [vmem:[%s347_s29 + $0x8] sm:$0xff]  ;;  %v549_v43 = vld [vmem:[%s347_s29 + $0x20] sm:$0xff]  ;;  %v552_v46 = vld [vmem:[%s347_s29 + $0x38] sm:$0xff] }
  0x18   : > { %456 = vperm.xlu2 %1007, %v434_v39   ;;  %v423_v53 = vld [vmem:[%s1504_s5] sm:$0xff]  ;;  %v426_v54 = vld [vmem:[%s1504_s5 + $0x18] sm:$0xff]  ;;  %v429_v55 = vld [vmem:[%s1504_s5 + $0x30] sm:$0xff] }
  0x19   : > { %409 = vmatpush.msra.mxu0 %v373_v16  ;;  %v424_v56 = vld [vmem:[%s1504_s5 + $0x8] sm:$0xff]  ;;  %v427_v57 = vld [vmem:[%s1504_s5 + $0x20] sm:$0xff]  ;;  %v430_v58 = vld [vmem:[%s1504_s5 + $0x38] sm:$0xff] }
  0x1a   : > { %v425_v59 = vld [vmem:[%s1504_s5 + $0x10] sm:$0xff]  ;;  %v428_v60 = vld [vmem:[%s1504_s5 + $0x28] sm:$0xff] }
  0x1b   : > { %410 = vmatpush.msra.mxu0 %v372_v20 }
  0x1d   : > { %411 = vmatpush.msra.mxu0 %v371_v24 }
  0x1e   : > { %461 = vperm.xlu0 %1005, %v435_v23  }
  0x1f   : > { %412 = vmatpush.msra.mxu0 %v370_v27  ;;  %466 = vperm.xlu1 %1006, %v436_v35  }
  0x20   : > { %471 = vperm.xlu2 %1007, %v437_v41  }
  0x21   : > { %413 = vmatpush.msra.mxu0 %v369_v28 }
  0x22   : > { %951 = vmatmul.msk.f32.vlgmr.msra.gmra.mxu0 %vm391_vm0, %v377_v29 }
  0x26   : > { %476 = vperm.xlu0 %1005, %v438_v30  }
  0x27   : > { %555 = vperm.xlu1 %1006, %v545_v36  }
  0x28   : > { %560 = vperm.xlu2 %1007, %v546_v42  }
  0x2a   : > { %952 = vmatmul.msk.f32.gmra.mxu0 %vm391_vm0, %v378_v31 }
  0x2e   : > { %565 = vperm.xlu0 %1005, %v547_v32  }
  0x2f   : > { %570 = vperm.xlu1 %1006, %v548_v38  }
  0x30   : > { %575 = vperm.xlu2 %1007, %v549_v43  }
  0x36   : > { %580 = vperm.xlu0 %1005, %v550_v33  }
  0x37   : > { %585 = vperm.xlu1 %1006, %v551_v40  }
  0x38   : > { %590 = vperm.xlu2 %1007, %v552_v46  }
  0x69   : > { %v452_v62 = vpop.permute.xlu2 %451 }
  0x72   : > { %v457_v0 = vpop.permute.xlu2 %456 }
  0x7a   : > { %v472_v2 = vpop.permute.xlu2 %471 }
  0x80   : > { %v389_v44 = vpop.permute.xlu0 %388 }
  0x81   : > { %v442_v61 = vpop.permute.xlu1 %441 }
  0x82   : > { %v561_v13 = vpop.permute.xlu2 %560 }
  0x88   : > { %v384_v47 = vpop.permute.xlu0 %383 }
  0x89   : > { %v447_v63 = vpop.permute.xlu1 %446 }
  0x8a   : > { %v576_v28 = vpop.permute.xlu2 %575 }
  0x90   : > { %v462_v10 = vpop.permute.xlu0 %461 }
  0x91   : > { %v467_v1 = vpop.permute.xlu1 %466 }
  0x98   : > { %v477_v24 = vpop.permute.xlu0 %476 }
  0x99   : > { %v556_v6 = vpop.permute.xlu1 %555 }
  0x9f   : > { %v415_v45 = vpop.f32.mrf.mxu0 }
  0xa0   : > { %v416_v49 = vadd.f32 %v415_v45, %v384_v47  ;;  %v566_v43 = vpop.permute.xlu0 %565 }
  0xa1   : > { %v571_v16 = vpop.permute.xlu1 %570 }
  0xa2   : > { %v421_v52 = vmax.f32 %v416_v49, 0.0 }
  0xa7   : > { %v418_v48 = vpop.f32.mrf.mxu0 }
  0xa8   : > { %v419_v50 = vadd.f32 %v418_v48, %v389_v44 }
  0xa9   : > { %v586_v34 = vpop.permute.xlu1 %585 }
  0xaa   : > { %v422_v51 = vmax.f32 %v419_v50, 0.0  ;;  %v591_v50 = vpop.permute.xlu2 %590 }
  0xac   : > { %518 = vmatpush.msra.mxu1 %v422_v51  ;;  %975 = vmatpush.msra.mxu2 %v422_v51 }
  0xad   : > { %976 = vmatpush.msra.mxu3 %v422_v51 }
  0xae   : > { %519 = vmatpush.msra.mxu1 %v421_v52  ;;  %977 = vmatpush.msra.mxu2 %v421_v52 }
  0xaf   : > { %978 = vmatpush.msra.mxu3 %v421_v52  ;;  %953 = vmatmul.msk.f32.vlgmr.msra.gmra.mxu1 %vm479_vm1, %v423_v53 }
  0xb0   : > { %956 = vmatmul.msk.f32.vlgmr.msra.gmra.mxu2 %vm479_vm1, %v426_v54  ;;  %959 = vmatmul.msk.f32.vlgmr.msra.gmra.mxu3 %vm479_vm1, %v429_v55 }
  0xb7   : > { %954 = vmatmul.msk.f32.gmra.mxu1 %vm479_vm1, %v424_v56 }
  0xb8   : > { %957 = vmatmul.msk.f32.gmra.mxu2 %vm479_vm1, %v427_v57  ;;  %960 = vmatmul.msk.f32.gmra.mxu3 %vm479_vm1, %v430_v58  ;;  %v760_v58 = vsub.f32 %v1145_v3, %v1148_v4 }
  0xbf   : > { %955 = vmatmul.msk.f32.gmra.mxu1 %vm479_vm1, %v425_v59  ;;  %v759_v59 = vsub.f32 %v1151_v5, %v1156_v7 }
  0xc0   : > { %958 = vmatmul.msk.f32.gmra.mxu2 %vm479_vm1, %v428_v60 }
 0x12c   : > { %v521_v19 = vpop.f32.mrf.mxu1 }
 0x12d   : > { %v522_v20 = vadd.f32 %v521_v19, %v442_v61 }
 0x12f   : > { %v593_v23 = vadd.f32 %v556_v6, %v522_v20 }
 0x131   : > { %v961_v27 = vmul.f32 -1.442695, %v593_v23 }
 0x133   : > { %1008 = vpow2.f32 %v961_v27  ;;  %v530_v29 = vpop.f32.mrf.mxu2  ;;  %v539_v30 = vpop.f32.mrf.mxu3 }
 0x134   : > { %v531_v31 = vadd.f32 %v530_v29, %v457_v0  ;;  %v540_v32 = vadd.f32 %v539_v30, %v472_v2  ;;  %v524_v33 = vpop.f32.mrf.mxu1  ;;  %v758_v0 = vsub.f32 %v1159_v8, %v1162_v9  ;;  %v756_v2 = vsub.f32 %v1175_v14, %v1178_v15  ;;  %v581_v29 = vpop.permute.xlu0 %580 }
 0x135   : > { %v525_v35 = vadd.f32 %v524_v33, %v447_v63 }
 0x136   : > { %v596_v36 = vadd.f32 %v571_v16, %v531_v31  ;;  %v599_v37 = vadd.f32 %v586_v34, %v540_v32 }
 0x137   : > { %v594_v38 = vadd.f32 %v561_v13, %v525_v35 }
 0x138   : > { %v964_v39 = vmul.f32 -1.442695, %v596_v36  ;;  %v967_v40 = vmul.f32 -1.442695, %v599_v37 }
 0x139   : > { %v1009_v41 = vpop.eup %1008  ;;  %v962_v42 = vmul.f32 -1.442695, %v594_v38 }
 0x13a   : > { %v625_v44 = vadd.f32 1.0, %v1009_v41  ;;  %1010 = vpow2.f32 %v964_v39 }
 0x13b   : > { %1012 = vpow2.f32 %v967_v40  ;;  %v533_v45 = vpop.f32.mrf.mxu2  ;;  %v542_v46 = vpop.f32.mrf.mxu3 }
 0x13c   : > { %1014 = vrcp.f32 %v625_v44  ;;  %v534_v47 = vadd.f32 %v533_v45, %v462_v10  ;;  %v543_v48 = vadd.f32 %v542_v46, %v477_v24  ;;  %v527_v49 = vpop.f32.mrf.mxu1  ;;  %v755_v10 = vsub.f32 %v1183_v17, %v1186_v18 }
 0x13d   : > { %1016 = vpow2.f32 %v962_v42  ;;  %v528_v51 = vadd.f32 %v527_v49, %v452_v62  ;;  %v757_v62 = vsub.f32 %v1167_v11, %v1170_v12  ;;  %v642_v24 = vand.u32 2147483647, %v625_v44 }
 0x13e   : > { %v597_v52 = vadd.f32 %v576_v28, %v534_v47  ;;  %v600_v53 = vadd.f32 %v591_v50, %v543_v48  ;;  %v644_v27 = vand.u32 2147483648, %v625_v44  ;;  %v754_v28 = vsub.f32 %v1194_v21, %v1197_v22 }
 0x13f   : > { %v595_v54 = vadd.f32 %v566_v43, %v528_v51  ;;  %vm638_vm3 = vweird.f32 %v625_v44  ;;  %vm1302_vm4 = vcmp.eq.f32.partialorder %v642_v24, 8.507059e+37 }
 0x140   : > { %v1011_v55 = vpop.eup %1010  ;;  %v965_v56 = vmul.f32 -1.442695, %v597_v52  ;;  %v968_v61 = vmul.f32 -1.442695, %v600_v53  ;;  %v645_v39 = vor.u32 1.1754944e-38, %v644_v27 }
 0x141   : > { %v1013_v57 = vpop.eup %1012  ;;  %v1280_v60 = vadd.f32 1.0, %v1011_v55  ;;  %v963_v13 = vmul.f32 -1.442695, %v595_v54 }
 0x142   : > { %v1015_v63 = vpop.eup %1014  ;;  %1018 = vpow2.f32 %v965_v56  ;;  %v1295_v30 = vadd.f32 1.0, %v1013_v57 }
 0x143   : > { %v1017_v6 = vpop.eup %1016  ;;  %1020 = vrcp.f32 %v1280_v60  ;;  %v536_v16 = vpop.f32.mrf.mxu2  ;;  %v634_v19 = vmul.f32 %v1015_v63, %v625_v44  ;;  %v687_v33 = vand.u32 2147483647, %v1280_v60  ;;  %v689_v34 = vand.u32 2147483648, %v1280_v60 }
 0x144   : > { %v1291_v20 = vadd.f32 1.0, %v1017_v6  ;;  %v537_v23 = vadd.f32 %v536_v16, %v467_v1  ;;  %1022 = vpow2.f32 %v968_v61  ;;  %v753_v1 = vsub.f32 %v1205_v25, %v1208_v26 }
 0x145   : > { %v635_v31 = vsub.f32 1.0, %v634_v19  ;;  %vm639_vm2 = vweird.f32 %v1015_v63  ;;  %vm683_vm5 = vweird.f32 %v1280_v60  ;;  %vm1311_vm7 = vcmp.eq.f32.partialorder %v687_v33, 8.507059e+37 }
 0x146   : > { %1024 = vrcp.f32 %v1291_v20  ;;  %v598_v32 = vadd.f32 %v581_v29, %v537_v23  ;;  %vm640_vm6 = vmor %vm638_vm3, %vm639_vm2  ;;  %v690_v44 = vor.u32 1.1754944e-38, %v689_v34  ;;  %vm653_vm8 = vweird.f32 %v1291_v20 }
 0x147   : > { %1026 = vpow2.f32 %v963_v13  ;;  %v636_v35 = vmul.f32 %v1015_v63, %v635_v31  ;;  %v657_v47 = vand.u32 2147483647, %v1291_v20  ;;  %v659_v48 = vand.u32 2147483648, %v1291_v20 }
 0x148   : > { %v1019_v36 = vpop.eup %1018  ;;  %v966_v37 = vmul.f32 -1.442695, %v598_v32  ;;  %1028 = vrcp.f32 %v1295_v30  ;;  %v732_v53 = vand.u32 2147483647, %v1295_v30  ;;  %v734_v24 = vand.u32 2147483648, %v1295_v30 }
 0x149   : > { %v1021_v40 = vpop.eup %1020  ;;  %v1307_v41 = vadd.f32 1.0, %v1019_v36  ;;  %v637_v42 = vadd.f32 %v1015_v63, %v636_v35  ;;  %vm1333_vm10 = vcmp.eq.f32.partialorder %v657_v47, 8.507059e+37  ;;  %v660_v31 = vor.u32 1.1754944e-38, %v659_v48 }
 0x14a   : > { %1030 = vpow2.f32 %v966_v37  ;;  %v679_v25 = vmul.f32 %v1021_v40, %v1280_v60  ;;  %v1023_v45 = vpop.eup %1022  ;;  %vm684_vm9 = vweird.f32 %v1021_v40  ;;  %v735_v17 = vor.u32 1.1754944e-38, %v734_v24 }
 0x14b   : > { %1032 = vrcp.f32 %v1307_v41  ;;  %v641_v46 = vsel %vm640_vm6, %v1015_v63, %v637_v42  ;;  %v1319_v50 = vadd.f32 1.0, %v1023_v45  ;;  %v702_v57 = vand.u32 2147483647, %v1307_v41  ;;  %vm685_vm12 = vmor %vm683_vm5, %vm684_vm9 }
 0x14c   : > { %v1025_v49 = vpop.eup %1024  ;;  %v646_v51 = vsel %vm1302_vm4, %v645_v39, %v641_v46  ;;  %v680_v52 = vsub.f32 1.0, %v679_v25  ;;  %v704_v6 = vand.u32 2147483648, %v1307_v41  ;;  %vm698_vm11 = vweird.f32 %v1307_v41 }
 0x14d   : > { %v1027_v54 = vpop.eup %1026  ;;  %v761_v55 = vmul.f32 %v753_v1, %v646_v51  ;;  %v649_v56 = vmul.f32 %v1025_v49, %v1291_v20  ;;  %1034 = vrcp.f32 %v1319_v50  ;;  %vm654_vm13 = vweird.f32 %v1025_v49 }
 0x14e   : > { %v1327_v61 = vadd.f32 1.0, %v1027_v54  ;;  %v681_v63 = vmul.f32 %v1021_v40, %v680_v52  ;;  %v1330_v13 = vpop.eup %1028  ;;  %vm1347_vm14 = vcmp.eq.f32.partialorder %v702_v57, 8.507059e+37  ;;  %v705_v37 = vor.u32 1.1754944e-38, %v704_v6  ;;  %vm655_vm15 = vmor %vm653_vm8, %vm654_vm13 }
 0x14f   : > { %v769_v16 = vadd.f32 %v761_v55, %v1208_v26  ;;  %v650_v19 = vsub.f32 1.0, %v649_v56  ;;  %vm743_vm1 = vweird.f32 %v1319_v50  ;;  %v747_v46 = vand.u32 2147483647, %v1319_v50 }
 0x150   : > { %v1031_v27 = vpop.eup %1030  ;;  %1036 = vrcp.f32 %v1327_v61  ;;  %v682_v29 = vadd.f32 %v1021_v40, %v681_v63  ;;  %v674_v38 = vand.u32 2147483648, %v1327_v61  ;;  %v672_v42 = vand.u32 2147483647, %v1327_v61 }
 0x151   : > { %v1033_v32 = vpop.eup %1032  ;;  %v1340_v33 = vadd.f32 1.0, %v1031_v27  ;;  %v790_v34 = vsel %vm391_vm0, %v769_v16, 0.0  ;;  %v651_v26 = vmul.f32 %v1025_v49, %v650_v19  ;;  %vm668_vm3 = vweird.f32 %v1327_v61 }
 0x152   : > { %791 = vadd.xlane.f32.xlu0 %v790_v34  ;;  %v686_v1 = vsel %vm685_vm12, %v1021_v40, %v682_v29  ;;  %v694_v35 = vmul.f32 %v1033_v32, %v1307_v41  ;;  %vm699_vm2 = vweird.f32 %v1033_v32  ;;  %v675_v20 = vor.u32 1.1754944e-38, %v674_v38 }
 0x153   : > { %1038 = vrcp.f32 %v1340_v33  ;;  %v691_v39 = vsel %vm1311_vm7, %v690_v44, %v686_v1  ;;  %v652_v60 = vadd.f32 %v1025_v49, %v651_v26  ;;  %v1035_v25 = vpop.eup %1034  ;;  %vm1372_vm4 = vcmp.eq.f32.partialorder %v672_v42, 8.507059e+37  ;;  %vm700_vm7 = vmor %vm698_vm11, %vm699_vm2 }
 0x154   : > { %v764_v40 = vmul.f32 %v756_v2, %v691_v39  ;;  %v695_v45 = vsub.f32 1.0, %v694_v35  ;;  %v739_v43 = vmul.f32 %v1035_v25, %v1319_v50  ;;  %v717_v54 = vand.u32 2147483647, %v1340_v33 }
 0x155   : > { %v656_v47 = vsel %vm655_vm15, %v1025_v49, %v652_v60  ;;  %v719_v55 = vand.u32 2147483648, %v1340_v33  ;;  %vm713_vm5 = vweird.f32 %v1340_v33  ;;  %vm744_vm6 = vweird.f32 %v1035_v25 }
 0x156   : > { %v1037_v44 = vpop.eup %1036  ;;  %v772_v48 = vadd.f32 %v764_v40, %v1178_v15  ;;  %v661_v14 = vsel %vm1333_vm10, %v660_v31, %v656_v47  ;;  %v696_v2 = vmul.f32 %v1033_v32, %v695_v45  ;;  %v740_v57 = vsub.f32 1.0, %v739_v43  ;;  %vm745_vm11 = vmor %vm743_vm1, %vm744_vm6 }
 0x157   : > { %v762_v51 = vmul.f32 %v754_v28, %v661_v14  ;;  %v664_v52 = vmul.f32 %v1037_v44, %v1327_v61  ;;  %v749_v6 = vand.u32 2147483648, %v1319_v50  ;;  %v724_v16 = vmul.f32 %v1330_v13, %v1295_v30 }
 0x158   : > { %v799_v15 = vsel %vm391_vm0, %v772_v48, 0.0  ;;  %v697_v56 = vadd.f32 %v1033_v32, %v696_v2  ;;  %vm669_vm8 = vweird.f32 %v1037_v44  ;;  %v741_v27 = vmul.f32 %v1035_v25, %v740_v57 }
 0x159   : > { %v1039_v63 = vpop.eup %1038  ;;  %800 = vadd.xlane.f32.xlu2 %v799_v15  ;;  %v770_v21 = vadd.f32 %v762_v51, %v1197_v22  ;;  %v665_v28 = vsub.f32 1.0, %v664_v52  ;;  %vm1391_vm9 = vcmp.eq.f32.partialorder %v747_v46, 8.507059e+37  ;;  %v725_v1 = vsub.f32 1.0, %v724_v16  ;;  %vm670_vm13 = vmor %vm668_vm3, %vm669_vm8 }
 0x15a   : > { %v701_v19 = vsel %vm700_vm7, %v1033_v32, %v697_v56  ;;  %v709_v23 = vmul.f32 %v1039_v63, %v1340_v33  ;;  %v742_v26 = vadd.f32 %v1035_v25, %v741_v27  ;;  %vm714_vm10 = vweird.f32 %v1039_v63 }
 0x15b   : > { %v793_v29 = vsel %vm391_vm0, %v770_v21, 0.0  ;;  %v706_v22 = vsel %vm1347_vm14, %v705_v37, %v701_v19  ;;  %v666_v31 = vmul.f32 %v1037_v44, %v665_v28  ;;  %v750_v36 = vor.u32 1.1754944e-38, %v749_v6  ;;  %vm715_vm15 = vmor %vm713_vm5, %vm714_vm10 }
 0x15c   : > { %794 = vadd.xlane.f32.xlu1 %v793_v29  ;;  %v765_v34 = vmul.f32 %v757_v62, %v706_v22  ;;  %v710_v32 = vsub.f32 1.0, %v709_v23  ;;  %vm729_vm12 = vweird.f32 %v1330_v13  ;;  %v746_v37 = vsel %vm745_vm11, %v1035_v25, %v742_v26 }
 0x15d   : > { %v667_v35 = vadd.f32 %v1037_v44, %v666_v31  ;;  %v726_v38 = vmul.f32 %v1330_v13, %v725_v1  ;;  %v751_v50 = vsel %vm1391_vm9, %v750_v36, %v746_v37  ;;  %vm781_vm14 = vcmask 7168  }
 0x15e   : > { %v773_v11 = vadd.f32 %v765_v34, %v1170_v12  ;;  %v711_v62 = vmul.f32 %v1039_v63, %v710_v32  ;;  %v768_v61 = vmul.f32 %v760_v58, %v751_v50  ;;  %v1065_v25 = vmov 0.0  }
 0x15f   : > { %v671_v39 = vsel %vm670_vm13, %v1037_v44, %v667_v35  ;;  %782 = vst.msk [vmem:[%s1402_s19] sm:$0xff] %vm781_vm14, %v1065_v25  ;;  %v720_v45 = vor.u32 1.1754944e-38, %v719_v55  ;;  %v727_v46 = vadd.f32 %v1330_v13, %v726_v38  ;;  %vm728_vm1 = vweird.f32 %v1295_v30 }
 0x160   : > { %v802_v60 = vsel %vm391_vm0, %v773_v11, 0.0  ;;  %v676_v42 = vsel %vm1372_vm4, %v675_v20, %v671_v39  ;;  %v712_v12 = vadd.f32 %v1039_v63, %v711_v62  ;;  %783 = vst.msk [vmem:[%s1402_s19 + $0x8] sm:$0xff] %vm781_vm14, %v1065_v25  ;;  %vm718_vm2 = vcmp.eq.f32.partialorder %v717_v54, 8.507059e+37  ;;  %vm730_vm3 = vmor %vm728_vm1, %vm729_vm12 }
 0x161   : > { %803 = vadd.xlane.f32.xlu0 %v802_v60  ;;  %v763_v40 = vmul.f32 %v755_v10, %v676_v42  ;;  %784 = vst.msk [vmem:[%s1402_s19 + $0x10] sm:$0xff] %vm781_vm14, %v1065_v25  ;;  %v731_v33 = vsel %vm730_vm3, %v1330_v13, %v727_v46  ;;  %vm733_vm4 = vcmp.eq.f32.partialorder %v732_v53, 8.507059e+37  ;;  %v776_v24 = vadd.f32 %v768_v61, %v1148_v4 }
 0x162   : > { %v716_v3 = vsel %vm715_vm15, %v1039_v63, %v712_v12  ;;  %785 = vst.msk [vmem:[%s1402_s19 + $0x18] sm:$0xff] %vm781_vm14, %v1065_v25  ;;  %v736_v43 = vsel %vm733_vm4, %v735_v17, %v731_v33 }
 0x163   : > { %v771_v58 = vadd.f32 %v763_v40, %v1186_v18  ;;  %v721_v10 = vsel %vm718_vm2, %v720_v45, %v716_v3  ;;  %786 = vst.msk [vmem:[%s1402_s19 + $0x20] sm:$0xff] %vm781_vm14, %v1065_v25  ;;  %v767_v13 = vmul.f32 %v759_v59, %v736_v43 }
 0x164   : > { %v766_v47 = vmul.f32 %v758_v0, %v721_v10  ;;  %787 = vst.msk [vmem:[%s1402_s19 + $0x28] sm:$0xff] %vm781_vm14, %v1065_v25  ;;  %v811_v0 = vsel %vm391_vm0, %v776_v24, 0.0 }
 0x165   : > { %v796_v18 = vsel %vm391_vm0, %v771_v58, 0.0  ;;  %788 = vst.msk [vmem:[%s1402_s19 + $0x30] sm:$0xff] %vm781_vm14, %v1065_v25  ;;  %v775_v5 = vadd.f32 %v767_v13, %v1156_v7 }
 0x166   : > { %797 = vadd.xlane.f32.xlu2 %v796_v18  ;;  %v774_v8 = vadd.f32 %v766_v47, %v1162_v9  ;;  %789 = vst.msk [vmem:[%s1402_s19 + $0x38] sm:$0xff] %vm781_vm14, %v1065_v25  ;;  %v814_v9 = vld [vmem:[%s1402_s19] sm:$0xff] }
 0x167   : > { %v808_v59 = vsel %vm391_vm0, %v775_v5, 0.0  ;;  %v815_v2 = vld [vmem:[%s1402_s19 + $0x8] sm:$0xff] }
 0x168   : > { %v805_v4 = vsel %vm391_vm0, %v774_v8, 0.0  ;;  %v816_v54 = vld [vmem:[%s1402_s19 + $0x10] sm:$0xff] }
 0x169   : > { %806 = vadd.xlane.f32.xlu1 %v805_v4  ;;  %812 = vadd.xlane.f32.xlu0 %v811_v0  ;;  %v817_v44 = vld [vmem:[%s1402_s19 + $0x18] sm:$0xff] }
 0x16a   : > { %v818_v51 = vld [vmem:[%s1402_s19 + $0x20] sm:$0xff] }
 0x16b   : > { %v819_v56 = vld [vmem:[%s1402_s19 + $0x28] sm:$0xff] }
 0x16c   : > { %v820_v16 = vld [vmem:[%s1402_s19 + $0x30] sm:$0xff] }
 0x16d   : > { %v821_v57 = vld [vmem:[%s1402_s19 + $0x38] sm:$0xff] }
 0x16e   : > { %809 = vadd.xlane.f32.xlu2 %v808_v59 }
 0x1c5   : > { %v792_v30 = vpop.xlane.xlu0 %791 }
 0x1c6   : > { %v822_v53 = vadd.f32 %v814_v9, %v792_v30 }
 0x1c8   : > { %831 = vst.msk [vmem:[%s1402_s19] sm:$0xff] %vm781_vm14, %v822_v53 }
 0x1cc   : > { %v801_v48 = vpop.xlane.xlu2 %800 }
 0x1cd   : > { %v825_v14 = vadd.f32 %v817_v44, %v801_v48 }
 0x1cf   : > { %834 = vst.msk [vmem:[%s1402_s19 + $0x18] sm:$0xff] %vm781_vm14, %v825_v14  ;;  %v795_v7 = vpop.xlane.xlu1 %794 }
 0x1d0   : > { %v823_v20 = vadd.f32 %v815_v2, %v795_v7 }
 0x1d2   : > { %832 = vst.msk [vmem:[%s1402_s19 + $0x8] sm:$0xff] %vm781_vm14, %v823_v20 }
 0x1d4   : > { %v804_v52 = vpop.xlane.xlu0 %803 }
 0x1d5   : > { %v826_v49 = vadd.f32 %v818_v51, %v804_v52 }
 0x1d7   : > { %835 = vst.msk [vmem:[%s1402_s19 + $0x20] sm:$0xff] %vm781_vm14, %v826_v49 }
 0x1d9   : > { %v798_v55 = vpop.xlane.xlu2 %797 }
 0x1da   : > { %v824_v15 = vadd.f32 %v816_v54, %v798_v55 }
 0x1dc   : > { %833 = vst.msk [vmem:[%s1402_s19 + $0x10] sm:$0xff] %vm781_vm14, %v824_v15  ;;  %v807_v63 = vpop.xlane.xlu1 %806  ;;  %v813_v21 = vpop.xlane.xlu0 %812 }
 0x1dd   : > { %v827_v28 = vadd.f32 %v819_v56, %v807_v63  ;;  %v829_v6 = vadd.f32 %v821_v57, %v813_v21 }
 0x1df   : > { %836 = vst.msk [vmem:[%s1402_s19 + $0x28] sm:$0xff] %vm781_vm14, %v827_v28 }
 0x1e0   : > { %838 = vst.msk [vmem:[%s1402_s19 + $0x38] sm:$0xff] %vm781_vm14, %v829_v6 }
 0x1e1   : > { %v810_v19 = vpop.xlane.xlu2 %809 }
 0x1e2   : > { %v828_v23 = vadd.f32 %v820_v16, %v810_v19 }
 0x1e4   : > { %837 = vst.msk [vmem:[%s1402_s19 + $0x30] sm:$0xff] %vm781_vm14, %v828_v23 }
 0x1e5 PF: > { %s17_s26 = sadd.s32 1, %s1062_s26   ;;  %s1519_s24 = smov %s1058_s25 }
 0x1e6   : > { %p14_p5 = scmp.ge.s32.totalorder %s17_s26, 4   ;;  %s1520_s25 = smov %s1522_s27 }
 0x1e8   :  { %16 = sbr.rel (!%p14_p5) target bundleno = 2 (0x2), region = 88 }

</bundles_post_ra>
